<compile_context>
chip_gen: v6e
topology: v6e:2x2x1
jax: 0.10.0
libtpu: 0.0.40
codegen_flags: <defaults>
</compile_context>

<pallas_src>
from functools import partial

import jax
import jax.numpy as jnp
import numpy as np
from jax.experimental import pallas as pl
from jax.experimental.pallas import tpu as pltpu

KH = KW = 3  # conv kernel size


def total_model_kernel(lhs_ref, wconv_ref, bconv_ref, wcls_ref, bcls_ref,
                       out_ref, pooled_acc, *, imgs_per_tile, rows_per_img):
    # lhs_ref   : (Mtile, Kp)   bf16 im2col patch rows for this M step
    # wconv_ref : (Kp, Fp)      bf16 conv weight (tap-major rows, zero-padded)
    # bconv_ref : (1, Fp)       f32 conv bias (zero-padded)
    # wcls_ref  : (Fp, NCP)     f32 classifier weight (zero-padded)
    # bcls_ref  : (1, NCP)      f32 classifier bias (zero-padded)
    # out_ref   : (Bblk, NCP)   f32 padded logits for this batch block
    # pooled_acc: (Bblk, Fp)    f32 per-image feature-sum accumulator (VMEM scratch)
    m = pl.program_id(1)

    @pl.when(m == 0)
    def _():
        pooled_acc[...] = jnp.zeros_like(pooled_acc)

    # Conv3x3 as ONE MXU matmul over the im2col rows (bf16 operands, f32 accumulate).
    acc = jnp.dot(lhs_ref[...], wconv_ref[...],
                  preferred_element_type=jnp.float32)            # (Mtile, Fp)
    feat = jnp.maximum(acc + bconv_ref[...], 0.0)                # bias + ReLU, lane-dense

    # Global-average-pool partial sums for the whole images covered by this tile
    # (exact f32 sublane reduction; no HBM pool matrix, no extra VMEM operand).
    if imgs_per_tile == 1:
        part = feat.sum(axis=0, keepdims=True)                   # (1, Fp)
    else:
        part = feat.reshape(imgs_per_tile, rows_per_img,
                            feat.shape[-1]).sum(axis=1)          # (imgs_per_tile, Fp)
    row0 = m * imgs_per_tile
    pooled_acc[pl.ds(row0, imgs_per_tile), :] += part

    # Classifier + single lane-dense store per batch block, at the last M step.
    @pl.when(m == pl.num_programs(1) - 1)
    def _():
        pooled = pooled_acc[...] * (1.0 / rows_per_img)
        logits = jnp.dot(pooled, wcls_ref[...],
                         preferred_element_type=jnp.float32) + bcls_ref[...]
        out_ref[...] = logits.astype(out_ref.dtype)


def _im2col(x_nchw):
    """NCHW -> lane-dense (B*H*W, 9*Cin) im2col patches (SAME padding)."""
    B, Cin, H, W = x_nchw.shape
    x = jnp.transpose(x_nchw, (0, 2, 3, 1))                      # NHWC
    xpad = jnp.pad(x, ((0, 0), (1, 1), (1, 1), (0, 0)))
    patches = [xpad[:, kh:kh + H, kw:kw + W, :]
               for kh in range(KH) for kw in range(KW)]
    lhs = jnp.concatenate(patches, axis=-1)                      # (B, H, W, 9*Cin)
    return lhs.reshape(B * H * W, KH * KW * Cin)


def _round_up(x, m):
    return ((x + m - 1) // m) * m


@partial(jax.jit, static_argnames=("grid_batch_splits", "mtile_rows_target"))
def total_model_forward(x_nchw, wconv, bconv, wcls, bcls,
                        grid_batch_splits=1, mtile_rows_target=1024):
    """x_nchw: (B, Cin, H, W) float32. Returns logits (B, num_classes).

    grid_batch_splits: leading "parallel" grid axis (v7x megacore). Only engaged when
      each core gets >= 8 output rows; otherwise the batch is folded into the M axis.
    mtile_rows_target: target im2col rows per pipelined M step (use ~half on v7x).
    """
    B, Cin, H, W = x_nchw.shape
    F = wconv.shape[-1]
    NC = wcls.shape[-1]
    K = KH * KW * Cin

    Kp = _round_up(K, 8)       # sublane-aligned weight rows (NOT 128: LHS is mem-bound)
    Fp = _round_up(F, 128)     # lane-dense feature channels
    NCP = _round_up(NC, 128)   # lane-dense logits

    # Batch split across TensorCores only when each core gets >= 8 output rows.
    G = grid_batch_splits
    if G > 1 and (B % G != 0 or (B // G) % 8 != 0):
        G = 1
    Bblk = B // G

    # M tiling: whole images per tile so pooling is a clean per-tile reduction.
    rows_per_img = H * W
    assert rows_per_img % 8 == 0, "H*W must be a multiple of 8 for sublane tiling"
    imgs_per_tile = min(max(1, mtile_rows_target // rows_per_img), Bblk)
    while Bblk % imgs_per_tile:
        imgs_per_tile -= 1
    Mtile = imgs_per_tile * rows_per_img
    n_m = Bblk // imgs_per_tile

    # --- wrapper-side packing (fused by XLA into one pre-pass) ---
    lhs = _im2col(x_nchw).astype(jnp.bfloat16)                   # (B*H*W, K)
    lhs = jnp.pad(lhs, ((0, 0), (0, Kp - K)))                    # (B*H*W, Kp)
    wconv_p = jnp.pad(wconv.reshape(K, F).astype(jnp.bfloat16),
                      ((0, Kp - K), (0, Fp - F)))                # (Kp, Fp)
    bconv_p = jnp.pad(bconv, ((0, 0), (0, Fp - F)))              # (1, Fp)
    wcls_p = jnp.pad(wcls, ((0, Fp - F), (0, NCP - NC)))         # (Fp, NCP)
    bcls_p = jnp.pad(bcls, ((0, 0), (0, NCP - NC)))              # (1, NCP)

    # VMEM budget: double-buffered LHS tile + grid-invariant operands + out + scratch.
    weight_bytes = Kp * Fp * 2 + Fp * 4 + Fp * NCP * 4 + NCP * 4
    vmem_needed = (2 * Mtile * Kp * 2        # LHS double buffer (bf16)
                   + 2 * weight_bytes        # weights/biases (double-buffered; on v7x
                                             # give them pipeline_mode=pl.Buffered(1))
                   + 2 * Bblk * NCP * 4      # output block
                   + Bblk * Fp * 4)          # pooled accumulator scratch
    vmem_limit = int(min(max(2 * vmem_needed, 16 << 20), 64 << 20))

    cost = pl.CostEstimate(
        flops=2 * B * H * W * Kp * Fp + B * H * W * Fp + 2 * B * Fp * NCP,
        transcendentals=0,
        bytes_accessed=(lhs.size * 2 + wconv_p.size * 2
                        + (bconv_p.size + wcls_p.size + bcls_p.size) * 4
                        + B * NCP * 4),
    )

    kernel = partial(total_model_kernel,
                     imgs_per_tile=imgs_per_tile, rows_per_img=rows_per_img)

    out_padded = pl.pallas_call(
        kernel,
        out_shape=jax.ShapeDtypeStruct((B, NCP), jnp.float32),
        grid_spec=pltpu.PrefetchScalarGridSpec(
            num_scalar_prefetch=0,
            grid=(G, n_m),
            in_specs=[
                pl.BlockSpec((Mtile, Kp), lambda g, m: (g * n_m + m, 0)),  # im2col rows
                pl.BlockSpec((Kp, Fp), lambda g, m: (0, 0)),               # conv weight
                pl.BlockSpec((1, Fp), lambda g, m: (0, 0)),                # conv bias
                pl.BlockSpec((Fp, NCP), lambda g, m: (0, 0)),              # cls weight
                pl.BlockSpec((1, NCP), lambda g, m: (0, 0)),               # cls bias
            ],
            out_specs=pl.BlockSpec((Bblk, NCP), lambda g, m: (g, 0)),
            scratch_shapes=[pltpu.VMEM((Bblk, Fp), jnp.float32)],
        ),
        compiler_params=pltpu.CompilerParams(
            dimension_semantics=("parallel", "arbitrary"),
            vmem_limit_bytes=vmem_limit),
        cost_estimate=cost,
    )(lhs, wconv_p, bconv_p, wcls_p, bcls_p)

    return out_padded[:, :NC]


def reference_forward(x_nchw, wconv, bconv, wcls, bcls):
    """Pure-JAX reference: 9-tap conv with the same bf16-operand / f32-accum math.

    Note: vs a true f32 PyTorch Conv2d, the bf16 conv operands give ~1e-3 relative
    differences in logits (fine for inference; intentional design choice).
    """
    x = jnp.transpose(x_nchw, (0, 2, 3, 1))
    B, H, W, Cin = x.shape
    F = wconv.shape[-1]
    xpad = jnp.pad(x, ((0, 0), (1, 1), (1, 1), (0, 0)))
    acc = jnp.zeros((B, H, W, F), jnp.float32)
    for kh in range(KH):
        for kw in range(KW):
            patch = xpad[:, kh:kh + H, kw:kw + W, :].astype(jnp.bfloat16)
            w = wconv[kh * KW + kw].astype(jnp.bfloat16)
            acc = acc + jnp.einsum('bhwc,cf->bhwf', patch, w,
                                   preferred_element_type=jnp.float32)
    feat = jnp.maximum(acc + bconv[0], 0.0)
    pooled = feat.mean(axis=(1, 2))
    return pooled @ wcls + bcls[0]


if __name__ == "__main__":
    # Small shapes consistent with a 4-D image input to the module.
    B, Cin, H, W = 2, 4, 16, 16
    F = 32             # backbone feature channels
    NUM_CLASSES = 10

    key = jax.random.PRNGKey(0)
    kx, kwc, kbc, kwl, kbl = jax.random.split(key, 5)

    x = jax.random.normal(kx, (B, Cin, H, W), jnp.float32)
    wconv = jax.random.normal(kwc, (KH * KW, Cin, F), jnp.float32) * 0.1
    bconv = jax.random.normal(kbc, (1, F), jnp.float32) * 0.1
    wcls = jax.random.normal(kwl, (F, NUM_CLASSES), jnp.float32) * 0.1
    bcls = jax.random.normal(kbl, (1, NUM_CLASSES), jnp.float32) * 0.1

    # mtile_rows_target=256 -> one image (256 rows) per M step, so the pipelined
    # reduction grid + pooled accumulator path is exercised even at batch=2.
    logits = total_model_forward(x, wconv, bconv, wcls, bcls,
                                 grid_batch_splits=1, mtile_rows_target=256)
    jax.block_until_ready(logits)

    ref = reference_forward(x, wconv, bconv, wcls, bcls)
    np.testing.assert_allclose(np.asarray(logits), np.asarray(ref),
                               rtol=2e-4, atol=2e-4)

    # TODO(synk): compute_loss_pred / randomized-smoothing loop is host-side
    # orchestration (CrossEntropyLoss over noisy replicas), not part of forward();
    # left out of the kernel.
    print("KERNEL_OK")
</pallas_src>

<mosaic_0001>
module attributes {stable_mosaic.version = 11 : i64} {
  func.func @total_model_kernel(%arg0: i32, %arg1: i32, %arg2: memref<256x40xbf16, #tpu.memory_space<vmem>>, %arg3: memref<40x128xbf16, #tpu.memory_space<vmem>>, %arg4: memref<1x128xf32, #tpu.memory_space<vmem>>, %arg5: memref<128x128xf32, #tpu.memory_space<vmem>>, %arg6: memref<1x128xf32, #tpu.memory_space<vmem>>, %arg7: memref<2x128xf32, #tpu.memory_space<vmem>>, %arg8: memref<2x128xf32, #tpu.memory_space<vmem>>) attributes {dimension_semantics = [#tpu.dimension_semantics<parallel>, #tpu.dimension_semantics<arbitrary>], iteration_bounds = array<i64: 1, 2>, scalar_prefetch = 0 : i64, scratch_operands = 1 : i64, tpu.core_type = #tpu.core_type<tc>, window_params = [{transform_indices = @transform_0, window_bounds = array<i64: 256, 40>}, {pipeline_mode = #tpu.pipeline_mode<synchronous>, transform_indices = @transform_1, window_bounds = array<i64: 40, 128>}, {pipeline_mode = #tpu.pipeline_mode<synchronous>, transform_indices = @transform_2, window_bounds = array<i64: 1, 128>}, {pipeline_mode = #tpu.pipeline_mode<synchronous>, transform_indices = @transform_3, window_bounds = array<i64: 128, 128>}, {pipeline_mode = #tpu.pipeline_mode<synchronous>, transform_indices = @transform_4, window_bounds = array<i64: 1, 128>}, {transform_indices = @transform_5, window_bounds = array<i64: 2, 128>}]} {
    %c0_i32 = arith.constant 0 : i32
    %0 = arith.cmpi eq, %arg1, %c0_i32 : i32
    %1 = arith.extui %0 : i1 to i32
    %c0_i32_0 = arith.constant 0 : i32
    %2 = arith.cmpi ne, %1, %c0_i32_0 : i32
    scf.if %2 {
      %cst_12 = arith.constant 0.000000e+00 : f32
      %22 = vector.broadcast %cst_12 : f32 to vector<2x128xf32>
      %c0_13 = arith.constant 0 : index
      %c0_14 = arith.constant 0 : index
      %23 = vector.load %arg8[%c0_13, %c0_14] : memref<2x128xf32, #tpu.memory_space<vmem>>, vector<2x128xf32>
      tpu.vector_store %arg8[%c0_13, %c0_14], %22 {strides = array<i32>} : memref<2x128xf32, #tpu.memory_space<vmem>>, vector<2x128xf32>,
    } else {
    }
    %c0 = arith.constant 0 : index
    %c0_1 = arith.constant 0 : index
    %3 = vector.load %arg2[%c0, %c0_1] : memref<256x40xbf16, #tpu.memory_space<vmem>>, vector<256x40xbf16>
    %c0_2 = arith.constant 0 : index
    %c0_3 = arith.constant 0 : index
    %4 = vector.load %arg3[%c0_2, %c0_3] : memref<40x128xbf16, #tpu.memory_space<vmem>>, vector<40x128xbf16>
    %cst = arith.constant dense<0.000000e+00> : vector<256x128xf32>
    %5 = tpu.matmul %3, %4, %cst {dimension_numbers = #tpu.dot_dimension_numbers<[1], [0], [0], [1], [0, 0, 1, 1], [], []>} : vector<256x40xbf16>, vector<40x128xbf16>, vector<256x128xf32> -> vector<256x128xf32>
    %c0_4 = arith.constant 0 : index
    %c0_5 = arith.constant 0 : index
    %6 = vector.load %arg4[%c0_4, %c0_5] : memref<1x128xf32, #tpu.memory_space<vmem>>, vector<1x128xf32>
    %7 = vector.broadcast %6 : vector<1x128xf32> to vector<256x128xf32>
    %8 = arith.addf %5, %7 : vector<256x128xf32>
    %cst_6 = arith.constant 0.000000e+00 : f32
    %9 = vector.broadcast %cst_6 : f32 to vector<256x128xf32>
    %10 = arith.maximumf %8, %9 : vector<256x128xf32>
    %cst_7 = arith.constant dense<0.000000e+00> : vector<128xf32>
    %11 = vector.multi_reduction <add>, %10, %cst_7 [0] : vector<256x128xf32> to vector<128xf32>
    %12 = vector.shape_cast %11 : vector<128xf32> to vector<1x128xf32>
    %c1_i32 = arith.constant 1 : i32
    %13 = arith.muli %arg1, %c1_i32 : i32
    %14 = arith.index_cast %13 : i32 to index
    %c0_8 = arith.constant 0 : index
    %15 = vector.load %arg8[%14, %c0_8] : memref<2x128xf32, #tpu.memory_space<vmem>>, vector<1x128xf32>
    %16 = arith.addf %15, %12 : vector<1x128xf32>
    %17 = arith.index_cast %13 : i32 to index
    %c0_9 = arith.constant 0 : index
    %18 = vector.load %arg8[%17, %c0_9] : memref<2x128xf32, #tpu.memory_space<vmem>>, vector<1x128xf32>
    tpu.vector_store %arg8[%17, %c0_9], %16 {strides = array<i32>} : memref<2x128xf32, #tpu.memory_space<vmem>>, vector<1x128xf32>,
    %c1_i32_10 = arith.constant 1 : i32
    %19 = arith.cmpi eq, %arg1, %c1_i32_10 : i32
    %20 = arith.extui %19 : i1 to i32
    %c0_i32_11 = arith.constant 0 : i32
    %21 = arith.cmpi ne, %20, %c0_i32_11 : i32
    scf.if %21 {
      %c0_12 = arith.constant 0 : index
      %c0_13 = arith.constant 0 : index
      %22 = vector.load %arg8[%c0_12, %c0_13] : memref<2x128xf32, #tpu.memory_space<vmem>>, vector<2x128xf32>
      %cst_14 = arith.constant 3.906250e-03 : f32
      %23 = vector.broadcast %cst_14 : f32 to vector<2x128xf32>
      %24 = arith.mulf %22, %23 : vector<2x128xf32>
      %c0_15 = arith.constant 0 : index
      %c0_16 = arith.constant 0 : index
      %25 = vector.load %arg5[%c0_15, %c0_16] : memref<128x128xf32, #tpu.memory_space<vmem>>, vector<128x128xf32>
      %cst_17 = arith.constant dense<0.000000e+00> : vector<2x128xf32>
      %26 = tpu.matmul %24, %25, %cst_17 {dimension_numbers = #tpu.dot_dimension_numbers<[1], [0], [0], [1], [0, 0, 1, 1], [], []>} : vector<2x128xf32>, vector<128x128xf32>, vector<2x128xf32> -> vector<2x128xf32>
      %c0_18 = arith.constant 0 : index
      %c0_19 = arith.constant 0 : index
      %27 = vector.load %arg6[%c0_18, %c0_19] : memref<1x128xf32, #tpu.memory_space<vmem>>, vector<1x128xf32>
      %28 = vector.broadcast %27 : vector<1x128xf32> to vector<2x128xf32>
      %29 = arith.addf %26, %28 : vector<2x128xf32>
      %c0_20 = arith.constant 0 : index
      %c0_21 = arith.constant 0 : index
      %30 = vector.load %arg7[%c0_20, %c0_21] : memref<2x128xf32, #tpu.memory_space<vmem>>, vector<2x128xf32>
      tpu.vector_store %arg7[%c0_20, %c0_21], %29 {strides = array<i32>} : memref<2x128xf32, #tpu.memory_space<vmem>>, vector<2x128xf32>,
    } else {
    }
    return
  }
  func.func @transform_0(%arg0: i32, %arg1: i32) -> (i32, i32) {
    %c2_i32 = arith.constant 2 : i32
    %0 = arith.muli %arg0, %c2_i32 : i32
    %1 = arith.addi %0, %arg1 : i32
    %c0_i32 = arith.constant 0 : i32
    %c0_i32_0 = arith.constant 0 : i32
    return %1, %c0_i32 : i32, i32
  }
  func.func @transform_1(%arg0: i32, %arg1: i32) -> (i32, i32) {
    %c0_i32 = arith.constant 0 : i32
    %c0_i32_0 = arith.constant 0 : i32
    %c0_i32_1 = arith.constant 0 : i32
    return %c0_i32, %c0_i32_0 : i32, i32
  }
  func.func @transform_2(%arg0: i32, %arg1: i32) -> (i32, i32) {
    %c0_i32 = arith.constant 0 : i32
    %c0_i32_0 = arith.constant 0 : i32
    %c0_i32_1 = arith.constant 0 : i32
    return %c0_i32, %c0_i32_0 : i32, i32
  }
  func.func @transform_3(%arg0: i32, %arg1: i32) -> (i32, i32) {
    %c0_i32 = arith.constant 0 : i32
    %c0_i32_0 = arith.constant 0 : i32
    %c0_i32_1 = arith.constant 0 : i32
    return %c0_i32, %c0_i32_0 : i32, i32
  }
  func.func @transform_4(%arg0: i32, %arg1: i32) -> (i32, i32) {
    %c0_i32 = arith.constant 0 : i32
    %c0_i32_0 = arith.constant 0 : i32
    %c0_i32_1 = arith.constant 0 : i32
    return %c0_i32, %c0_i32_0 : i32, i32
  }
  func.func @transform_5(%arg0: i32, %arg1: i32) -> (i32, i32) {
    %c0_i32 = arith.constant 0 : i32
    %c0_i32_0 = arith.constant 0 : i32
    return %arg0, %c0_i32 : i32, i32
  }
}

</mosaic_0001>

<bundles_post_ra>
// kernel: total_model_forward.1
= control target key start
LH: loop header
LB: loop body
LE: loop exit
PB: predicated region body
PF: predicated region fallthrough
CT: control target
= control target key end

     0   :  { %10 = vsyncpa [#allocation4], 0  ;;  %s1141_s18 = smov 0   ;;  %s1143_s19 = smov 0   ;;  %s1338_s0 = inlined_call_operand.vmem [shape: bf16[512,40], index: 0, kind: input, shape index: {}]   ;;  %s1339_s1 = inlined_call_operand.vmem [shape: bf16[40,128], index: 1, kind: input, shape index: {}]   ;;  %s1340_s2 = inlined_call_operand.vmem [shape: f32[1,128], index: 2, kind: input, shape index: {}]   ;;  %s1341_s3 = inlined_call_operand.vmem [shape: f32[128,128], index: 3, kind: input, shape index: {}]   ;;  %s1342_s4 = inlined_call_operand.vmem [shape: f32[1,128], index: 4, kind: input, shape index: {}]   ;;  %s1343_s5 = inlined_call_operand.hbm [shape: f32[2,128], index: 5, kind: output, shape index: {}]  }
   0x1   :  { %s1145_s20 = smov 0  }
   0x2 LB: > { %s836_s21 = sadd.s32 4294967295, %s1105_s20   ;;  %s25_s22 = sadd.s32 1, %s1101_s19  ;;  %s1105_s20 = sphi %s1145_s20, %s16_s20   ;;  %s1101_s19 = sphi %s1143_s19, %s1346_s19   ;;  %s1097_s18 = sphi %s1141_s18, %s1345_s18  }
   0x3   : > { %p26_p0 = scmp.ge.s32.totalorder %s25_s22, 2  ;;  %p839_p1 = scmp.ge.s32.totalorder %s1105_s20, 1 }
   0x4   : > { %p209_p2 = scmp.lt.s32.totalorder %s1105_s20, 3 }
   0x5   : > { %s1348_s22 = smov (%p26_p0, %s25_s22), 0 }
   0x6   : > { %p210_p3 = pnand %p839_p1, %p209_p2 }
   0x7   : > { %s840_s23 = sshll.u32 (!%p210_p3), %s1097_s18, 5  ;;  %p842_p5 = scmp.ne.s32.totalorder (!%p210_p3), %s1097_s18, 0 }
   0x8   : > { %213 = sbr.rel (%p210_p3) target bundleno = 557 (0x22d), region = 40  ;;  %p237_p4 = scmp.lt.s32.totalorder (!%p210_p3), %s840_s23, 63 }
   0xd   : > { %s1350_s23 = smov (!%p237_p4, %s840_s23), 63  ;;  %248 = sbr.rel (%p842_p5) target bundleno = 20 (0x14), region = 44 }
   0xe   : > { %s841_s24 = sshll.u32 %s1350_s23, 2 }
   0xf   : > { %s1166_s27 = scalar_lea.vmem %s1338_s0, %s841_s24 }
  0x12   : > { %v1107_v0 = vmov 0.0  }
  0x13   : > { %249 = vst [vmem:[#allocation2] sm:$0x3] %v1107_v0 }
  0x14 PF: > { %v1036_v1 = vld [vmem:[%s1339_s1 + $0x10] ss:$0 sps:$4 sm:$0xff]   ;;  %vm438_vm0 = vcmask 1043456   ;;  %v1037_v2 = vld [vmem:[%s1339_s1 + $0x8] sm:$0xff]   ;;  %v1039_v4 = vld [vmem:[%s1166_s27] sm:$0xff]   ;;  %vm389_vm1 = vcmask 326656  }
  0x15   : > { %1000 = vmatprep.subr.msk.bf16.mxu0 %vm438_vm0, %v1036_v1  ;;  %v440_v3 = vsel %vm438_vm0, %v1036_v1, 0  ;;  %1001 = vmatprep.subr.msk.bf16.mxu1 %vm438_vm0, %v1036_v1  ;;  %v1038_v5 = vld [vmem:[%s1339_s1] sm:$0xff]   ;;  %v1040_v6 = vld [vmem:[%s1166_s27 + $0x8] sm:$0xff]   ;;  %v1041_v7 = vld [vmem:[%s1166_s27 + $0x10] sm:$0xff]   ;;  %s672_s11 = scalar_lea.vmem [#allocation2], %s1097_s18  ;;  %p879_p6 = scmp.ne.s32.totalorder %s1097_s18, 1 }
  0x16   : > { %922 = vmatpush3.bf16.msra.mxu0 %v440_v3  ;;  %997 = vmatpush3.bf16.msra.mxu1 %v440_v3  ;;  %v1047_v8 = vld [vmem:[%s1166_s27 + $0x40] sm:$0xff]   ;;  %v1048_v9 = vld [vmem:[%s1166_s27 + $0x48] sm:$0xff]   ;;  %v1049_v10 = vld [vmem:[%s1166_s27 + $0x50] sm:$0xff]  }
  0x17   : > { %923 = vmatprep.subr.bf16.mxu0 %v1037_v2  ;;  %995 = vmatprep.subr.bf16.mxu1 %v1037_v2  ;;  %v1042_v11 = vld [vmem:[%s1166_s27 + $0x18] sm:$0xff]   ;;  %v1043_v13 = vld [vmem:[%s1166_s27 + $0x20] sm:$0xff]   ;;  %v1044_v15 = vld [vmem:[%s1166_s27 + $0x28] sm:$0xff]  }
  0x18   : > { %927 = vmatprep.mubr.msk.bf16.mxu0 %vm389_vm1, %v1039_v4  ;;  %943 = vmatprep.mubr.msk.bf16.mxu1 %vm389_vm1, %v1047_v8  ;;  %v1050_v12 = vld [vmem:[%s1166_s27 + $0x58] sm:$0xff]   ;;  %v1051_v14 = vld [vmem:[%s1166_s27 + $0x60] sm:$0xff]   ;;  %v1052_v16 = vld [vmem:[%s1166_s27 + $0x68] sm:$0xff]  }
  0x19   : > { %v1045_v17 = vld [vmem:[%s1166_s27 + $0x30] sm:$0xff]   ;;  %v1046_v19 = vld [vmem:[%s1166_s27 + $0x38] sm:$0xff]   ;;  %v1217_v25 = vld [vmem:[%s1340_s2] ss:$0 sm:$0xff] }
  0x1a   : > { %924 = vmatpush3.bf16.msra.mxu0 %v1037_v2  ;;  %998 = vmatpush3.bf16.msra.mxu1 %v1037_v2  ;;  %v1053_v18 = vld [vmem:[%s1166_s27 + $0x70] sm:$0xff]   ;;  %v1054_v20 = vld [vmem:[%s1166_s27 + $0x78] sm:$0xff]  }
  0x1b   : > { %925 = vmatprep.subr.bf16.mxu0 %v1038_v5  ;;  %996 = vmatprep.subr.bf16.mxu1 %v1038_v5 }
  0x1e   : > { %926 = vmatpush3.bf16.msra.mxu0 %v1038_v5  ;;  %999 = vmatpush3.bf16.msra.mxu1 %v1038_v5 }
  0x21   : > { %928 = vmatmul.mubr.msk.bf16.vlgmr.msra.gmra.mxu0 %vm389_vm1, %v1040_v6  ;;  %944 = vmatmul.mubr.msk.bf16.vlgmr.msra.gmra.mxu1 %vm389_vm1, %v1048_v9 }
  0x22   : > { %931 = vmatprep.mubr.msk.bf16.mxu0 %vm389_vm1, %v1041_v7  ;;  %947 = vmatprep.mubr.msk.bf16.mxu1 %vm389_vm1, %v1049_v10 }
  0x29   : > { %932 = vmatmul.mubr.msk.bf16.gmra.mxu0 %vm389_vm1, %v1042_v11  ;;  %948 = vmatmul.mubr.msk.bf16.gmra.mxu1 %vm389_vm1, %v1050_v12 }
  0x2a   : > { %935 = vmatprep.mubr.msk.bf16.mxu0 %vm389_vm1, %v1043_v13  ;;  %951 = vmatprep.mubr.msk.bf16.mxu1 %vm389_vm1, %v1051_v14 }
  0x31   : > { %936 = vmatmul.mubr.msk.bf16.gmra.mxu0 %vm389_vm1, %v1044_v15  ;;  %952 = vmatmul.mubr.msk.bf16.gmra.mxu1 %vm389_vm1, %v1052_v16 }
  0x32   : > { %939 = vmatprep.mubr.msk.bf16.mxu0 %vm389_vm1, %v1045_v17  ;;  %955 = vmatprep.mubr.msk.bf16.mxu1 %vm389_vm1, %v1053_v18 }
  0x39   : > { %940 = vmatmul.mubr.msk.bf16.gmra.mxu0 %vm389_vm1, %v1046_v19  ;;  %956 = vmatmul.mubr.msk.bf16.gmra.mxu1 %vm389_vm1, %v1054_v20 }
  0xe1   : > { %v929_v21 = vpop.f32.mrf.mxu0  ;;  %v1210_v22 = vpop.f32.mrf.mxu1 }
  0xe2   : > { %v485_v30 = vadd.f32 %v929_v21, %v1217_v25 }
  0xe3   : > { %v476_v23 = vpop.f32.mrf.mxu0  ;;  %v1212_v24 = vpop.f32.mrf.mxu1 }
  0xe4   : > { %v477_v27 = vadd.f32 %v1217_v25, %v476_v23  ;;  %v605_v38 = vmax.f32 %v485_v30, 0.0 }
  0xe5   : > { %v930_v26 = vpop.f32.mrf.mxu0  ;;  %v1220_v29 = vpop.f32.mrf.mxu1 }
  0xe6   : > { %v603_v33 = vmax.f32 %v477_v27, 0.0  ;;  %v488_v34 = vadd.f32 %v930_v26, %v1217_v25 }
  0xe7   : > { %v479_v28 = vpop.f32.mrf.mxu0  ;;  %v543_v37 = vpop.f32.mrf.mxu1 }
  0xe8   : > { %v480_v31 = vadd.f32 %v1217_v25, %v479_v28  ;;  %v606_v42 = vmax.f32 %v488_v34, 0.0 }
  0xe9   : > { %v933_v32 = vpop.f32.mrf.mxu0  ;;  %v1226_v45 = vpop.f32.mrf.mxu1 }
  0xea   : > { %v604_v35 = vmax.f32 %v480_v31, 0.0  ;;  %v501_v46 = vadd.f32 %v933_v32, %v1217_v25  ;;  %v541_v31 = vadd.f32 %v1217_v25, %v1212_v24 }
  0xeb   : > { %v492_v36 = vpop.f32.mrf.mxu0  ;;  %v556_v55 = vpop.f32.mrf.mxu1 }
  0xec   : > { %v635_v39 = vadd.f32 %v604_v35, %v603_v33  ;;  %v493_v40 = vadd.f32 %v1217_v25, %v492_v36  ;;  %v609_v56 = vmax.f32 %v501_v46, 0.0  ;;  %v544_v35 = vadd.f32 %v1217_v25, %v543_v37 }
  0xed   : > { %v934_v41 = vpop.f32.mrf.mxu0  ;;  %v950_v63 = vpop.f32.mrf.mxu1  ;;  %v557_v24 = vadd.f32 %v1217_v25, %v556_v55 }
  0xee   : > { %v636_v43 = vadd.f32 %v635_v39, %v605_v38  ;;  %v607_v47 = vmax.f32 %v493_v40, 0.0  ;;  %v504_v52 = vadd.f32 %v934_v41, %v1217_v25  ;;  %v549_v38 = vadd.f32 %v1210_v22, %v1217_v25 }
  0xef   : > { %v495_v44 = vpop.f32.mrf.mxu0  ;;  %v559_v9 = vpop.f32.mrf.mxu1  ;;  %v619_v39 = vmax.f32 %v541_v31, 0.0  ;;  %v552_v41 = vadd.f32 %v1220_v29, %v1217_v25  ;;  %v565_v22 = vadd.f32 %v1226_v45, %v1217_v25  ;;  %v568_v29 = vadd.f32 %v950_v63, %v1217_v25  ;;  %v673_v31 = vld [vmem:[%s672_s11] sm:$0x1] }
  0xf0   : > { %v637_v48 = vadd.f32 %v636_v43, %v606_v42  ;;  %v496_v49 = vadd.f32 %v1217_v25, %v495_v44  ;;  %v610_v60 = vmax.f32 %v504_v52, 0.0  ;;  %v620_v42 = vmax.f32 %v544_v35, 0.0 }
  0xf1   : > { %v937_v50 = vpop.f32.mrf.mxu0  ;;  %v953_v17 = vpop.f32.mrf.mxu1  ;;  %v621_v46 = vmax.f32 %v549_v38, 0.0  ;;  %v560_v37 = vadd.f32 %v1217_v25, %v559_v9  ;;  %v626_v55 = vmax.f32 %v568_v29, 0.0 }
  0xf2   : > { %v638_v51 = vadd.f32 %v637_v48, %v607_v47  ;;  %v608_v53 = vmax.f32 %v496_v49, 0.0  ;;  %v517_v0 = vadd.f32 %v937_v50, %v1217_v25  ;;  %v622_v48 = vmax.f32 %v552_v41, 0.0 }
  0xf3   : > { %v508_v54 = vpop.f32.mrf.mxu0  ;;  %v572_v28 = vpop.f32.mrf.mxu1 }
  0xf4   : > { %v639_v57 = vadd.f32 %v638_v51, %v608_v53  ;;  %v509_v58 = vadd.f32 %v1217_v25, %v508_v54  ;;  %v613_v10 = vmax.f32 %v517_v0, 0.0  ;;  %v623_v51 = vmax.f32 %v557_v24, 0.0 }
  0xf5   : > { %v938_v59 = vpop.f32.mrf.mxu0  ;;  %v954_v36 = vpop.f32.mrf.mxu1  ;;  %v624_v54 = vmax.f32 %v560_v37, 0.0  ;;  %v581_v0 = vadd.f32 %v953_v17, %v1217_v25 }
  0xf6   : > { %v640_v61 = vadd.f32 %v639_v57, %v609_v56  ;;  %v611_v1 = vmax.f32 %v509_v58, 0.0  ;;  %v520_v6 = vadd.f32 %v938_v59, %v1217_v25  ;;  %v625_v57 = vmax.f32 %v565_v22, 0.0 }
  0xf7   : > { %v511_v62 = vpop.f32.mrf.mxu0  ;;  %v575_v44 = vpop.f32.mrf.mxu1  ;;  %v573_v59 = vadd.f32 %v1217_v25, %v572_v28 }
  0xf8   : > { %v641_v2 = vadd.f32 %v640_v61, %v610_v60  ;;  %v512_v3 = vadd.f32 %v1217_v25, %v511_v62  ;;  %v614_v14 = vmax.f32 %v520_v6, 0.0  ;;  %v576_v61 = vadd.f32 %v1217_v25, %v575_v44 }
  0xf9   : > { %v941_v4 = vpop.f32.mrf.mxu0  ;;  %v957_v50 = vpop.f32.mrf.mxu1 }
  0xfa   : > { %v642_v5 = vadd.f32 %v641_v2, %v611_v1  ;;  %v612_v7 = vmax.f32 %v512_v3, 0.0  ;;  %v533_v18 = vadd.f32 %v941_v4, %v1217_v25  ;;  %v627_v1 = vmax.f32 %v573_v59, 0.0 }
  0xfb   : > { %v524_v8 = vpop.f32.mrf.mxu0  ;;  %v588_v56 = vpop.f32.mrf.mxu1  ;;  %v584_v3 = vadd.f32 %v954_v36, %v1217_v25  ;;  %v628_v4 = vmax.f32 %v576_v61, 0.0 }
  0xfc   : > { %v643_v11 = vadd.f32 %v642_v5, %v612_v7  ;;  %v525_v12 = vadd.f32 %v1217_v25, %v524_v8  ;;  %v617_v30 = vmax.f32 %v533_v18, 0.0  ;;  %v629_v5 = vmax.f32 %v581_v0, 0.0 }
  0xfd   : > { %v942_v13 = vpop.f32.mrf.mxu0  ;;  %v958_v62 = vpop.f32.mrf.mxu1  ;;  %v589_v7 = vadd.f32 %v1217_v25, %v588_v56  ;;  %v630_v8 = vmax.f32 %v584_v3, 0.0 }
  0xfe   : > { %v644_v15 = vadd.f32 %v643_v11, %v613_v10  ;;  %v615_v19 = vmax.f32 %v525_v12, 0.0  ;;  %v536_v26 = vadd.f32 %v942_v13, %v1217_v25  ;;  %v597_v11 = vadd.f32 %v957_v50, %v1217_v25 }
  0xff   : > { %v527_v16 = vpop.f32.mrf.mxu0  ;;  %v591_v63 = vpop.f32.mrf.mxu1  ;;  %v631_v12 = vmax.f32 %v589_v7, 0.0 }
 0x100   : > { %v645_v20 = vadd.f32 %v644_v15, %v614_v14  ;;  %v528_v21 = vadd.f32 %v1217_v25, %v527_v16  ;;  %v618_v33 = vmax.f32 %v536_v26, 0.0  ;;  %v592_v10 = vadd.f32 %v1217_v25, %v591_v63 }
 0x101   : > { %v600_v15 = vadd.f32 %v958_v62, %v1217_v25  ;;  %v633_v17 = vmax.f32 %v597_v11, 0.0 }
 0x102   : > { %v646_v23 = vadd.f32 %v645_v20, %v615_v19  ;;  %v616_v27 = vmax.f32 %v528_v21, 0.0  ;;  %v632_v16 = vmax.f32 %v592_v10, 0.0 }
 0x103   : > { %v634_v19 = vmax.f32 %v600_v15, 0.0 }
 0x104   : > { %v647_v32 = vadd.f32 %v646_v23, %v616_v27 }
 0x106   : > { %v648_v34 = vadd.f32 %v647_v32, %v617_v30 }
 0x108   : > { %v649_v40 = vadd.f32 %v648_v34, %v618_v33 }
 0x10a   : > { %v650_v43 = vadd.f32 %v649_v40, %v619_v39 }
 0x10c   : > { %v651_v47 = vadd.f32 %v650_v43, %v620_v42 }
 0x10e   : > { %v652_v49 = vadd.f32 %v651_v47, %v621_v46 }
 0x110   : > { %v653_v52 = vadd.f32 %v652_v49, %v622_v48 }
 0x112   : > { %v654_v53 = vadd.f32 %v653_v52, %v623_v51 }
 0x114   : > { %v655_v58 = vadd.f32 %v654_v53, %v624_v54 }
 0x116   : > { %v656_v60 = vadd.f32 %v655_v58, %v625_v57 }
 0x118   : > { %v657_v45 = vadd.f32 %v656_v60, %v626_v55 }
 0x11a   : > { %v658_v2 = vadd.f32 %v657_v45, %v627_v1 }
 0x11c   : > { %v659_v6 = vadd.f32 %v658_v2, %v628_v4 }
 0x11e   : > { %v660_v9 = vadd.f32 %v659_v6, %v629_v5 }
 0x120   : > { %v661_v13 = vadd.f32 %v660_v9, %v630_v8 }
 0x122   : > { %v662_v14 = vadd.f32 %v661_v13, %v631_v12 }
 0x124   : > { %v663_v18 = vadd.f32 %v662_v14, %v632_v16 }
 0x126   : > { %v664_v20 = vadd.f32 %v663_v18, %v633_v17 }
 0x128   : > { %v665_v21 = vadd.f32 %v664_v20, %v634_v19 }
 0x12a   : > { %v666_v23 = vrot.slane %v665_v21, 4 }
 0x12c   : > { %v667_v26 = vadd.f32 %v666_v23, %v665_v21 }
 0x12e   : > { %v668_v27 = vrot.slane %v667_v26, 2 }
 0x130   : > { %v669_v28 = vadd.f32 %v668_v27, %v667_v26 }
 0x132   : > { %v670_v30 = vrot.slane %v669_v28, 1 }
 0x134   : > { %v671_v32 = vadd.f32 %v670_v30, %v669_v28  ;;  %679 = sbr.rel (%p879_p6) target bundleno = 542 (0x21e), region = 48 }
 0x136   : > { %v674_v33 = vadd.f32 %v673_v31, %v671_v32 }
 0x138   : > { %675 = vst [vmem:[%s672_s11] sm:$0x1] %v674_v33 }
 0x139   : > { %v697_v25 = vld [vmem:[%s1341_s3 + $0x78] sm:$0xff]  ;;  %v1108_v34 = vmov 0.0   ;;  %v696_v35 = vld [vmem:[%s1341_s3 + $0x70] sm:$0xff]  ;;  %vm1109_vm2 = vmmov 0   ;;  %v695_v36 = vld [vmem:[%s1341_s3 + $0x68] sm:$0xff] }
 0x13a   : > { %959 = vmatprep.subr.mxu0 %v1108_v34  ;;  %991 = vmatprep.mubr.msk.f32.mxu0 %vm1109_vm2, %v1108_v34  ;;  %v694_v38 = vld [vmem:[%s1341_s3 + $0x60] sm:$0xff]  ;;  %v693_v39 = vld [vmem:[%s1341_s3 + $0x58] sm:$0xff]  ;;  %v692_v40 = vld [vmem:[%s1341_s3 + $0x50] sm:$0xff] }
 0x13b   : > { %960 = vmatpush3.msra.mxu0 %v697_v25  ;;  %v691_v41 = vld [vmem:[%s1341_s3 + $0x48] sm:$0xff]  ;;  %v690_v42 = vld [vmem:[%s1341_s3 + $0x40] sm:$0xff]  ;;  %v689_v43 = vld [vmem:[%s1341_s3 + $0x38] sm:$0xff] }
 0x13c   : > { %961 = vmatprep.subr.mxu0 %v1108_v34  ;;  %v688_v44 = vld [vmem:[%s1341_s3 + $0x30] sm:$0xff]  ;;  %v687_v46 = vld [vmem:[%s1341_s3 + $0x28] sm:$0xff]  ;;  %v686_v47 = vld [vmem:[%s1341_s3 + $0x20] sm:$0xff] }
 0x13d   : > { %962 = vmatpush3.msra.mxu0 %v696_v35  ;;  %v685_v24 = vld [vmem:[%s1341_s3 + $0x18] sm:$0xff]  ;;  %v684_v48 = vld [vmem:[%s1341_s3 + $0x10] sm:$0xff]  ;;  %v683_v37 = vld [vmem:[%s1341_s3 + $0x8] sm:$0xff] }
 0x13e   : > { %963 = vmatprep.subr.mxu0 %v1108_v34  ;;  %v682_v50 = vld [vmem:[%s1341_s3] sm:$0xff] }
 0x13f   : > { %964 = vmatpush3.msra.mxu0 %v695_v36  ;;  %v680_v49 = vld [vmem:[#allocation2] sm:$0x3] }
 0x140   : > { %965 = vmatprep.subr.mxu0 %v1108_v34  ;;  %v681_v22 = vmul.f32 0.00390625, %v680_v49  ;;  %v880_v51 = vld [vmem:[%s1342_s4] ss:$0 sm:$0xff] }
 0x141   : > { %966 = vmatpush3.msra.mxu0 %v694_v38 }
 0x142   : > { %967 = vmatprep.subr.mxu0 %v1108_v34 }
 0x143   : > { %968 = vmatpush3.msra.mxu0 %v693_v39 }
 0x144   : > { %969 = vmatprep.subr.mxu0 %v1108_v34 }
 0x145   : > { %970 = vmatpush3.msra.mxu0 %v692_v40 }
 0x146   : > { %971 = vmatprep.subr.mxu0 %v1108_v34 }
 0x147   : > { %972 = vmatpush3.msra.mxu0 %v691_v41 }
 0x148   : > { %973 = vmatprep.subr.mxu0 %v1108_v34 }
 0x149   : > { %974 = vmatpush3.msra.mxu0 %v690_v42 }
 0x14a   : > { %975 = vmatprep.subr.mxu0 %v1108_v34 }
 0x14b   : > { %976 = vmatpush3.msra.mxu0 %v689_v43 }
 0x14c   : > { %977 = vmatprep.subr.mxu0 %v1108_v34 }
 0x14d   : > { %978 = vmatpush3.msra.mxu0 %v688_v44 }
 0x14e   : > { %979 = vmatprep.subr.mxu0 %v1108_v34 }
 0x14f   : > { %980 = vmatpush3.msra.mxu0 %v687_v46 }
 0x150   : > { %981 = vmatprep.subr.mxu0 %v1108_v34 }
 0x151   : > { %982 = vmatpush3.msra.mxu0 %v686_v47 }
 0x152   : > { %983 = vmatprep.subr.mxu0 %v1108_v34 }
 0x153   : > { %984 = vmatpush3.msra.mxu0 %v685_v24 }
 0x154   : > { %985 = vmatprep.subr.mxu0 %v1108_v34 }
 0x155   : > { %986 = vmatpush3.msra.mxu0 %v684_v48 }
 0x156   : > { %987 = vmatprep.subr.mxu0 %v1108_v34 }
 0x157   : > { %988 = vmatpush3.msra.mxu0 %v683_v37 }
 0x158   : > { %989 = vmatprep.subr.mxu0 %v1108_v34 }
 0x159   : > { %990 = vmatpush3.msra.mxu0 %v682_v50 }
 0x15a   : > { %992 = vmatmul.mubr.f32.vlgmr.msra.gmra.mxu0 %v681_v22 }
 0x21a   : > { %v771_v52 = vpop.f32.mrf.mxu0 }
 0x21b   : > { %v772_v53 = vadd.f32 %v880_v51, %v771_v52 }
 0x21c   : > { %v993_v29 = vpop.f32.mrf.mxu0 }
 0x21d   : > { %775 = vst [vmem:[#allocation3] sm:$0x3] %v772_v53 }
 0x21e PF: > { %p1314_p7 = scmp.eq.s32.totalorder %s836_s21, 1  ;;  %s1110_s30 = smov [#allocation3]  }
 0x21f   : > { %s785_s6 = sshll.u32 %s1110_s30, 4  ;;  %s786_s6 = int_to_ptr.vmem [resolvable:$true] %s785_s6 }
 0x220   : > { %s1055_s7 = scalar_lea.vmem %s786_s6, 32  ;;  %p1062_p11 = scmp.lt.s32.totalorder %s786_s6, %s786_s6 }
 0x221   : > { %p1056_p8 = scmp.ne.s32.totalorder %s786_s6, %s1055_s7  ;;  %p1063_p12 = scmp.lt.s32.totalorder %s1055_s7, %s1055_s7 }
 0x223   : > { %p1057_p9 = pnand %p1056_p8, %p1314_p7  ;;  %p1064_p13 = por %p1063_p12, %p1062_p11 }
 0x225   : > { %p1058_p10 = pneg %p1057_p9 }
 0x227   : > { %p1065_p0 = pnand %p1064_p13, %p1058_p10 }
 0x229   : > { %1068 = shalt.err (!%p1065_p0)
}
 0x22a   : > { %1003 = dma.vmem_to_hbm [thread:$0]  (%p1314_p7), %s786_s6, 32, %s1343_s5, [#allocation4]  }
 0x22b   : > { %1092 = dma.done.wait (%p1314_p7), [#allocation4], 32  }
 0x22c   : > { %1094 = vsyncadd (%p1314_p7), [#allocation4], 4294967264 }
 0x22d PF: > { %s16_s20 = sadd.s32 1, %s1105_s20   ;;  %s1345_s18 = smov %s1101_s19 }
 0x22e   : > { %p13_p1 = scmp.ge.s32.totalorder %s16_s20, 4   ;;  %s1346_s19 = smov %s1348_s22 }
 0x230   :  { %15 = sbr.rel (!%p13_p1) target bundleno = 2 (0x2), region = 77 }
 0x235   :  { %798 = vsyncpa [#allocation4], 1 }
 0x236   :  { %800 = vsyncpa [#allocation4 + $0x1], 1 }

</bundles_post_ra>
